<compile_context>
chip_gen: v7x
topology: tpu7x:2x2x1
jax: 0.10.0
libtpu: 0.0.40
codegen_flags: <defaults>
</compile_context>

<pallas_src>
import numpy as np

import jax
import jax.numpy as jnp
from jax.experimental import pallas as pl
from jax.experimental.pallas import tpu as pltpu


def _liteformer_kernel(x_ref, t_ref, o_ref):
    """One n-block grid step: fused block-diagonal Toeplitz matmul on the MXU.

    x_ref: (block_n, H*L)        input slab (rows of the reshaped input)
    t_ref: (H*L, H*out_len)      block-diagonal transposed Toeplitz (resident)
    o_ref: (block_n, H*out_len)  output slab (rows of the conv outputs)
    """
    o_ref[...] = jnp.dot(
        x_ref[...], t_ref[...], preferred_element_type=jnp.float32
    ).astype(o_ref.dtype)


def _build_blockdiag_toeplitz(dw_weights, L, out_len, pad, dtype):
    """Block-diagonal (H*L, H*out_len) matrix T with
       T[h*L + j, h*out_len + o] = w[h, j - o + pad]  (0 elsewhere / out of band)

    Encodes torch.nn.functional.conv1d (cross-correlation, zero padding=pad,
    stride 1) for all H heads as one matmul operand, so the kernel never
    needs a padded input tensor and processes all heads per grid step.
    """
    H, K = dw_weights.shape
    j_idx = jnp.arange(L)[:, None]                 # (L, 1)
    o_idx = jnp.arange(out_len)[None, :]           # (1, out_len)
    k_idx = j_idx - o_idx + pad                    # (L, out_len)
    valid = (k_idx >= 0) & (k_idx < K)
    k_clip = jnp.clip(k_idx, 0, K - 1)
    band = dw_weights[:, k_clip]                   # (H, L, out_len)
    band = jnp.where(valid[None, :, :], band, 0).astype(dtype)
    eye = jnp.eye(H, dtype=dtype)
    blk = jnp.einsum("hg,hlo->hlgo", eye, band)    # (H, L, H, out_len)
    return blk.reshape(H * L, H * out_len)


def _pick_block_n(N, row_bytes, target_bytes=4 << 20):
    """Sublane block over the batch-like axis N.

    Multiple of 8, sized so the double-buffered in+out working set is about
    `target_bytes`.  Prefers an exact divisor of N; otherwise returns a
    multiple of 8 and the caller pads N up to a multiple of it.
    """
    cap = max(8, int(target_bytes // max(row_bytes, 1)))
    cap -= cap % 8
    cap = max(cap, 8)
    if N <= cap:
        return max(N, 1)              # one block covering all rows (full dim)
    bn = cap
    while bn >= 8:
        if N % bn == 0:
            return bn
        bn -= 8
    return cap                        # no divisor -> caller pads N


def liteformer_forward(x, dw_weights, *, start_index, stop_index,
                       attention_head, kernel_size, block_n=None):
    """Eval-mode LiteFormer forward. dw_weights: (H, K) depthwise conv kernels."""
    B, L, D = x.shape
    S = stop_index - start_index
    H = attention_head
    K = kernel_size
    assert dw_weights.shape == (H, K)
    assert (B * S) % H == 0, "reshape(-1, H, L) must be exact"
    N = (B * S) // H

    pad = K // 2
    out_len = L + 2 * pad - K + 1                 # torch conv1d output length
    assert (S * out_len) % L == 0, "final reshape(B, L, -1) must be exact"

    # PyTorch slice + row-major reshape; no transposes anywhere (the (N, H*L)
    # view has the exact linear layout the PyTorch reshape implies).
    inp = x[:, :, start_index:stop_index].reshape(N, H * L)

    # All heads fused into one block-diagonal Toeplitz, pre-cast to x.dtype.
    toeplitz = _build_blockdiag_toeplitz(dw_weights, L, out_len, pad, x.dtype)

    itemsize = jnp.dtype(x.dtype).itemsize
    row_bytes = 2 * (H * L + H * out_len) * itemsize   # double-buffered in+out row
    if block_n is None:
        block_n = _pick_block_n(N, row_bytes)

    n_blocks = -(-N // block_n)                   # ceil division
    N_pad = n_blocks * block_n
    if N_pad != N:
        inp = jnp.pad(inp, ((0, N_pad - N), (0, 0)))
    grid = (n_blocks,)

    ws_bytes = block_n * row_bytes + 2 * toeplitz.size * itemsize
    vmem_limit = int(min(48 << 20, max(2 * ws_bytes, 16 << 20)))

    cost = pl.CostEstimate(
        flops=2 * N_pad * (H * L) * (H * out_len),
        transcendentals=0,
        bytes_accessed=int((inp.size + toeplitz.size + N_pad * H * out_len)
                           * itemsize),
    )

    out = pl.pallas_call(
        _liteformer_kernel,
        out_shape=jax.ShapeDtypeStruct((N_pad, H * out_len), x.dtype),
        grid=grid,
        in_specs=[
            pl.BlockSpec((block_n, H * L), lambda nb: (nb, 0)),
            pl.BlockSpec((H * L, H * out_len), lambda nb: (0, 0)),
        ],
        out_specs=pl.BlockSpec((block_n, H * out_len), lambda nb: (nb, 0)),
        compiler_params=pltpu.CompilerParams(
            dimension_semantics=("parallel",),
            vmem_limit_bytes=vmem_limit),
        cost_estimate=cost,
    )(inp, toeplitz)

    if N_pad != N:
        out = out[:N]
    # Row-major flatten of (N, H, out_len) == (N, H*out_len), so this is the
    # module's reshape(B, L, -1) with no intervening transpose.
    return out.reshape(B, L, -1)


if __name__ == "__main__":
    # Small shapes consistent with the module's constraints:
    #   S = stop - start = 12, H = 3  ->  N = B*S/H integer
    #   K = 16 (even) -> conv output length L+1; S*out_len divisible by L.
    B, L, D = 2, 6, 16
    start_index, stop_index = 2, 14      # S = 12
    H, K = 3, 16

    key = jax.random.PRNGKey(0)
    kx, kw = jax.random.split(key)
    x = jax.random.normal(kx, (B, L, D), dtype=jnp.float32)

    # Deterministic Xavier-uniform init of the H depthwise Conv1d kernels,
    # each torch weight has shape (1, 1, K) -> fan_in = fan_out = K.
    bound = float(np.sqrt(6.0 / (K + K)))
    dw_weights = jax.random.uniform(kw, (H, K), minval=-bound, maxval=bound,
                                    dtype=jnp.float32)

    out = liteformer_forward(
        x, dw_weights,
        start_index=start_index, stop_index=stop_index,
        attention_head=H, kernel_size=K,
    )
    out = jax.block_until_ready(out)

    # Pure-JAX reference (depthwise cross-correlation == torch conv1d).
    S = stop_index - start_index
    N = B * S // H
    inp_ref = x[:, :, start_index:stop_index].reshape(N, H, L)
    ref = jax.lax.conv_general_dilated(
        inp_ref, dw_weights.reshape(H, 1, K),
        window_strides=(1,), padding=[(K // 2, K // 2)],
        dimension_numbers=("NCH", "OIH", "NCH"), feature_group_count=H,
    ).reshape(B, L, -1)

    np.testing.assert_allclose(np.asarray(out), np.asarray(ref),
                               rtol=1e-5, atol=1e-5)
    print("KERNEL_OK")
</pallas_src>

<mosaic_0001>
module attributes {stable_mosaic.version = 11 : i64} {
  func.func @_liteformer_kernel(%arg0: i32, %arg1: memref<8x18xf32, #tpu.memory_space<vmem>>, %arg2: memref<18x21xf32, #tpu.memory_space<vmem>>, %arg3: memref<8x21xf32, #tpu.memory_space<vmem>>) attributes {dimension_semantics = [#tpu.dimension_semantics<parallel>], iteration_bounds = array<i64: 1>, scalar_prefetch = 0 : i64, scratch_operands = 0 : i64, tpu.core_type = #tpu.core_type<tc>, window_params = [{transform_indices = @transform_0, window_bounds = array<i64: 8, 18>}, {pipeline_mode = #tpu.pipeline_mode<synchronous>, transform_indices = @transform_1, window_bounds = array<i64: 18, 21>}, {transform_indices = @transform_2, window_bounds = array<i64: 8, 21>}]} {
    %c0 = arith.constant 0 : index
    %c0_0 = arith.constant 0 : index
    %0 = vector.load %arg1[%c0, %c0_0] : memref<8x18xf32, #tpu.memory_space<vmem>>, vector<8x18xf32>
    %c0_1 = arith.constant 0 : index
    %c0_2 = arith.constant 0 : index
    %1 = vector.load %arg2[%c0_1, %c0_2] : memref<18x21xf32, #tpu.memory_space<vmem>>, vector<18x21xf32>
    %cst = arith.constant dense<0.000000e+00> : vector<8x21xf32>
    %2 = tpu.matmul %0, %1, %cst {dimension_numbers = #tpu.dot_dimension_numbers<[1], [0], [0], [1], [0, 0, 1, 1], [], []>} : vector<8x18xf32>, vector<18x21xf32>, vector<8x21xf32> -> vector<8x21xf32>
    %c0_3 = arith.constant 0 : index
    %c0_4 = arith.constant 0 : index
    %3 = vector.load %arg3[%c0_3, %c0_4] : memref<8x21xf32, #tpu.memory_space<vmem>>, vector<8x21xf32>
    tpu.vector_store %arg3[%c0_3, %c0_4], %2 {strides = array<i32>} : memref<8x21xf32, #tpu.memory_space<vmem>>, vector<8x21xf32>,
    return
  }
  func.func @transform_0(%arg0: i32) -> (i32, i32) {
    %c0_i32 = arith.constant 0 : i32
    %c0_i32_0 = arith.constant 0 : i32
    return %arg0, %c0_i32 : i32, i32
  }
  func.func @transform_1(%arg0: i32) -> (i32, i32) {
    %c0_i32 = arith.constant 0 : i32
    %c0_i32_0 = arith.constant 0 : i32
    %c0_i32_1 = arith.constant 0 : i32
    return %c0_i32, %c0_i32_0 : i32, i32
  }
  func.func @transform_2(%arg0: i32) -> (i32, i32) {
    %c0_i32 = arith.constant 0 : i32
    %c0_i32_0 = arith.constant 0 : i32
    return %arg0, %c0_i32 : i32, i32
  }
}

</mosaic_0001>

<bundles_post_ra>
// kernel: tpu_custom_call.1
= control target key start
LH: loop header
LB: loop body
LE: loop exit
PB: predicated region body
PF: predicated region fallthrough
CT: control target
= control target key end

     0   :  { %7 = vsyncpa [#allocation3], 0  ;;  %s302_s0 = inlined_call_operand.hbm [shape: f32[8,18], index: 0, kind: input, shape index: {}]   ;;  %s303_s1 = inlined_call_operand.hbm [shape: f32[18,21], index: 1, kind: input, shape index: {}]   ;;  %s304_s2 = inlined_call_operand.hbm [shape: f32[8,21], index: 2, kind: output, shape index: {}]  }
   0x1   :  { %8 = vsyncpa [#allocation6], 0 }
   0x2   :  { %9 = vsyncpa [#allocation4], 0  ;;  %s236_s9 = smov [#allocation2]   ;;  %s237_s11 = smov [#allocation5]  }
   0x3   :  { %s16_s10 = sshll.u32 %s236_s9, 4  ;;  %s25_s12 = sshll.u32 %s237_s11, 4  ;;  %s17_s10 = int_to_ptr.vmem [resolvable:$true] %s16_s10  ;;  %s259_s12 = int_to_ptr.vmem [resolvable:$true] %s25_s12 }
   0x4   :  { %s164_s15 = scalar_lea.hbm %s302_s0, 128 }
   0x5   :  { %p165_p0 = scmp.ne.s32.totalorder %s302_s0, %s164_s15  ;;  %p168_p1 = scmp.lt.u32.totalorder %s164_s15, %s302_s0 }
   0x7   :  { %p170_p2 = pnand %p168_p1, %p165_p0 }
   0x9   :  { %173 = shalt.err (!%p170_p2)
}
   0xa   :  { %s174_s20 = scalar_lea.vmem %s17_s10, 128  ;;  %p179_p4 = scmp.lt.s32.totalorder %s17_s10, %s17_s10 }
   0xb   :  { %p175_p3 = scmp.ne.s32.totalorder %s17_s10, %s174_s20  ;;  %p180_p5 = scmp.lt.s32.totalorder %s174_s20, %s174_s20 }
   0xd   :  { %p181_p6 = por %p180_p5, %p179_p4 }
   0xf   :  { %p182_p7 = pnand %p181_p6, %p175_p3 }
  0x11   :  { %185 = shalt.err (!%p182_p7)
}
  0x12   :  { %19 = dma.hbm_to_vmem [thread:$0]  %s302_s0, 128, %s17_s10, [#allocation3]  }
  0x13   :  { %s186_s25 = scalar_lea.hbm %s303_s1, 384 }
  0x14   :  { %p187_p8 = scmp.ne.s32.totalorder %s303_s1, %s186_s25  ;;  %p190_p9 = scmp.lt.u32.totalorder %s186_s25, %s303_s1 }
  0x16   :  { %p192_p10 = pnand %p190_p9, %p187_p8 }
  0x18   :  { %195 = shalt.err (!%p192_p10)
}
  0x19   :  { %s196_s30 = scalar_lea.vmem %s259_s12, 384  ;;  %p201_p12 = scmp.lt.s32.totalorder %s259_s12, %s259_s12 }
  0x1a   :  { %p197_p11 = scmp.ne.s32.totalorder %s259_s12, %s196_s30  ;;  %p202_p13 = scmp.lt.s32.totalorder %s196_s30, %s196_s30 }
  0x1c   :  { %p203_p0 = por %p202_p13, %p201_p12 }
  0x1e   :  { %p204_p1 = pnand %p203_p0, %p197_p11 }
  0x20   :  { %207 = shalt.err (!%p204_p1)
}
  0x21   :  { %s238_s0 = smov 128   ;;  %s239_s3 = smov 8  }
  0x22   :  { %31 = dma.hbm_to_vmem [thread:$0]  %s303_s1, 384, %s259_s12, [#allocation6], %s238_s0, %s238_s0, %s239_s3  }
  0x23   :  { %230 = dma.done.wait [#allocation3], 128  }
  0x24   :  { %231 = vsyncadd [#allocation3], 4294967168 }
  0x25   :  { %232 = dma.done.wait [#allocation6], 384  }
  0x26   :  { %233 = vsyncadd [#allocation6], 4294966912  ;;  %v240_v0 = vmov 0.0|0.0   ;;  %vm241_vm0 = vmmov 0   ;;  %v242_v1 = vmov 0.0   ;;  %v39_v2 = vld [vmem:[#allocation5] sm:$0xff] }
  0x27   :  { %153 = vmatprep.subr.bf16.mxu0 %v240_v0  ;;  %150 = vmatprep.mubr.msk.f32.mxu0 %vm241_vm0, %v242_v1  ;;  %v40_v3 = vld [vmem:[#allocation5 + $0x8] sm:$0xff]  ;;  %v41_v5 = vld [vmem:[#allocation5 + $0x10] sm:$0x3]  ;;  %vm46_vm1 = vcmask 1041408   ;;  %v38_v6 = vld [vmem:[#allocation2] sm:$0xff]  ;;  %vm42_vm2 = vcmask 146432  }
  0x28   :  { %v154_v4 = vpack.c.bf16 %v40_v3, %v39_v2  ;;  %s243_s1 = smov [#allocation7]   ;;  %vm120_vm3 = vcmask 171008  }
  0x29   :  { %s128_s6 = sshll.u32 %s243_s1, 4  ;;  %s129_s6 = int_to_ptr.vmem [resolvable:$true] %s128_s6 }
  0x2a   :  { %155 = vmatpush3.bf16.msra.mxu0 %v154_v4  ;;  %s208_s7 = scalar_lea.vmem %s129_s6, 128  ;;  %p213_p3 = scmp.lt.s32.totalorder %s129_s6, %s129_s6 }
  0x2b   :  { %148 = vmatprep.subr.mxu0 %v242_v1  ;;  %p209_p2 = scmp.ne.s32.totalorder %s129_s6, %s208_s7  ;;  %p214_p4 = scmp.lt.s32.totalorder %s208_s7, %s208_s7 }
  0x2d   :  { %p215_p5 = por %p214_p4, %p213_p3 }
  0x2e   :  { %149 = vmatpush3.msk.msra.mxu0 %vm46_vm1, %v41_v5 }
  0x2f   :  { %151 = vmatmul.mubr.msk.f32.vlgmr.msra.gmra.mrb[0].mxu0 %vm42_vm2, %v38_v6  ;;  %p216_p6 = pnand %p215_p5, %p209_p2 }
 0x102   :  { %v116_v7 = vpop.f32.mrb[0].mxu0 }
 0x103   :  { %v152_v8 = vpop.f32.mrb[1].mxu0  ;;  %121 = vst.msk [vmem:[#allocation7] sm:$0xff] %vm120_vm3, %v116_v7 }
 0x104   :  { %219 = shalt.err (!%p216_p6)
}
 0x105   :  { %s220_s10 = scalar_lea.hbm %s304_s2, 128 }
 0x106   :  { %p221_p7 = scmp.ne.s32.totalorder %s304_s2, %s220_s10  ;;  %p224_p8 = scmp.lt.u32.totalorder %s220_s10, %s304_s2 }
 0x108   :  { %p226_p9 = pnand %p224_p8, %p221_p7 }
 0x10a   :  { %229 = shalt.err (!%p226_p9)
}
 0x10b   :  { %131 = dma.vmem_to_hbm [thread:$0]  %s129_s6, 128, %s304_s2, [#allocation4]  }
 0x10c   :  { %234 = dma.done.wait [#allocation4], 128  }
 0x10d   :  { %235 = vsyncadd [#allocation4], 4294967168 }
 0x10e   :  { %135 = vsyncpa [#allocation3], 1 }
 0x10f   :  { %136 = vsyncpa [#allocation6], 1 }
 0x110   :  { %137 = vsyncpa [#allocation4], 1 }

</bundles_post_ra>
